<compile_context>
chip_gen: v5e
topology: v5e:2x2
jax: 0.10.0
libtpu: 0.0.40
codegen_flags: <defaults>
</compile_context>

<pallas_src>
import math
from functools import partial
from types import SimpleNamespace

import jax
import jax.numpy as jnp
from jax import lax
from jax.experimental import pallas as pl
from jax.experimental.pallas import tpu as pltpu


# ----------------------------------------------------------------------------
# Fused per-batch-tile kernel:
#   encoders + concat + embedding + cross-attn + vocab head
# ----------------------------------------------------------------------------
def _fused_encdec_kernel(*refs, mol_enable, dummy_len):
    bf16 = jnp.bfloat16
    f32 = jnp.float32

    if mol_enable:
        (ids_ref, prot_ref, mol_ref,
         tok_emb_ref, prot_w_ref, prot_b_ref, mol_w_ref, mol_b_ref,
         wq_ref, wkv_ref, wo_ref, wvoc_ref, bvoc_ref, o_ref) = refs
    else:
        (ids_ref, prot_ref,
         tok_emb_ref, prot_w_ref, prot_b_ref,
         wq_ref, wkv_ref, wo_ref, wvoc_ref, bvoc_ref, o_ref) = refs

    Bt, T, _ = ids_ref.shape
    Lp, Dp = prot_ref.shape[1], prot_ref.shape[2]
    D = wq_ref.shape[0]
    V = tok_emb_ref.shape[0]

    # --- decoder token embedding as a one-hot MXU matmul over Bt*T folded rows
    #     (stays in VMEM, no separate gather / HBM round trip of tgt_emb).
    # TODO(synk): at production vocab sizes replace with a scalar-prefetch
    # gather (ids in SMEM + per-row DMA) so tok_emb can stay in HBM.
    ids = ids_ref[...]                                          # (Bt, T, 1) i32
    tok_iota = lax.broadcasted_iota(jnp.int32, (Bt, T, V), 2)   # (Bt, T, V)
    onehot = (tok_iota == ids).astype(bf16).reshape(Bt * T, V)
    tgt2 = jnp.dot(onehot, tok_emb_ref[...],
                   preferred_element_type=f32)                  # (Bt*T, D) f32

    # --- protein encoder: linear projection on folded (Bt*Lp, Dp) rows
    prot2 = jnp.dot(prot_ref[...].reshape(Bt * Lp, Dp).astype(bf16),
                    prot_w_ref[...],
                    preferred_element_type=f32) + prot_b_ref[...]   # (Bt*Lp, D)

    if mol_enable:
        Lm, Dm = mol_ref.shape[1], mol_ref.shape[2]
        mol2 = jnp.dot(mol_ref[...].reshape(Bt * Lm, Dm).astype(bf16),
                       mol_w_ref[...],
                       preferred_element_type=f32) + mol_b_ref[...]  # (Bt*Lm, D)
        mem = jnp.concatenate([prot2.reshape(Bt, Lp, D),
                               mol2.reshape(Bt, Lm, D)], axis=1)     # (Bt, M, D)
        M = Lp + Lm
    else:
        # dummy (zero) molecule representation handled analytically below.
        mem = prot2.reshape(Bt, Lp, D)
        M = Lp

    # --- cross attention (1/sqrt(D) already folded into wq at construction)
    q = jnp.dot(tgt2.astype(bf16), wq_ref[...],
                preferred_element_type=f32).reshape(Bt, T, D)        # (Bt, T, D)
    kv = jnp.dot(mem.reshape(Bt * M, D).astype(bf16), wkv_ref[...],
                 preferred_element_type=f32)                         # (Bt*M, 2D)
    k = kv[:, :D].reshape(Bt, M, D)
    v = kv[:, D:].reshape(Bt, M, D)

    scores = jnp.einsum('bqd,bkd->bqk', q.astype(bf16), k.astype(bf16),
                        preferred_element_type=f32)                  # (Bt, T, M)

    if mol_enable:
        m = jnp.max(scores, axis=-1, keepdims=True)
        e = jnp.exp(scores - m)
        denom = jnp.sum(e, axis=-1, keepdims=True)
    else:
        # Disabled molecule encoder: the dummy zero memory rows have k = v = 0,
        # so each contributes score exactly 0 -> exp(-m) to the denominator and
        # 0 to the numerator.  Accounting for them analytically avoids DMAing
        # and matmul-ing dummy_len rows of zeros.
        m = jnp.maximum(jnp.max(scores, axis=-1, keepdims=True), 0.0)
        e = jnp.exp(scores - m)
        denom = (jnp.sum(e, axis=-1, keepdims=True)
                 + float(dummy_len) * jnp.exp(-m))

    probs = e * pl.reciprocal(denom, approx=True)
    attn = jnp.einsum('bqk,bkd->bqd', probs.astype(bf16), v.astype(bf16),
                      preferred_element_type=f32).reshape(Bt * T, D)

    h = tgt2 + jnp.dot(attn.astype(bf16), wo_ref[...],
                       preferred_element_type=f32)                   # residual
    logits = jnp.dot(h.astype(bf16), wvoc_ref[...],
                     preferred_element_type=f32) + bvoc_ref[...]     # (Bt*T, V)
    o_ref[...] = logits.reshape(Bt, T, V).astype(o_ref.dtype)        # lane-dense


# ----------------------------------------------------------------------------
# EncoderDecoder wrapper (mirrors the PyTorch module's forward, `else` branch)
# ----------------------------------------------------------------------------
class EncoderDecoderPallas:
    def __init__(self, params, configs, *, logits_dtype=jnp.float32, batch_tile=8):
        self.configs = configs
        self.logits_dtype = logits_dtype
        self.batch_tile = int(batch_tile)
        bf16, f32 = jnp.bfloat16, jnp.float32
        D = params["wq"].shape[0]
        V = params["wvoc"].shape[1]
        self.D, self.V = D, V
        self.Dm = params["mol_w"].shape[0]
        # torch: zeros(1, max_len, decoder.dim) buffer; realized analytically
        # in the kernel (zero k/v rows) when the molecule encoder is disabled.
        self.dummy_len = int(configs.prot2token_model.molecule_encoder.max_len)
        # one-time weight transforms: bf16 matmul inputs, f32 post-accum biases,
        # fused Wk|Wv, and the 1/sqrt(D) attention scale folded into wq.
        self.p = dict(
            tok_emb=params["tok_emb"].astype(bf16),
            prot_w=params["prot_w"].astype(bf16),
            prot_b=params["prot_b"].reshape(1, D).astype(f32),
            mol_w=params["mol_w"].astype(bf16),
            mol_b=params["mol_b"].reshape(1, D).astype(f32),
            wq=(params["wq"] * (D ** -0.5)).astype(bf16),
            wkv=jnp.concatenate([params["wk"], params["wv"]], axis=1).astype(bf16),
            wo=params["wo"].astype(bf16),
            wvoc=params["wvoc"].astype(bf16),
            bvoc=params["bvoc"].reshape(1, V).astype(f32),
        )

    def __call__(self, batch, mode=False, **kwargs):
        if mode in ("prediction", "inference_greedy", "inference_beam_search"):
            # TODO(synk): autoregressive prediction / greedy / beam-search decode
            # branches are not implemented; only the teacher-forcing branch.
            raise NotImplementedError(mode)
        mol_enable = bool(self.configs.prot2token_model.molecule_encoder.enable)
        prot = batch["protein_feats"]
        mol = batch["molecule_feats"] if mol_enable else None
        return self._forward(batch["target_input"], prot, mol, mol_enable)

    def _forward(self, target_input, protein_feats, molecule_feats, mol_enable):
        p = self.p
        D, V = self.D, self.V
        B, T = target_input.shape
        _, Lp, Dp = protein_feats.shape
        ids = target_input.astype(jnp.int32).reshape(B, T, 1)

        # batch tile: fold Bt batch elements per grid step so the
        # weight-stationary matmuls see Bt*T / Bt*Lp rows (MXU row occupancy)
        # and the ~0.35us/step fixed overhead is amortized.
        bt = min(B, self.batch_tile)
        while B % bt:
            bt -= 1

        per_batch3 = lambda g: (g, 0, 0)
        shared = lambda g: (0, 0)

        kernel = partial(_fused_encdec_kernel, mol_enable=mol_enable,
                         dummy_len=self.dummy_len)

        in_specs = [
            pl.BlockSpec((bt, T, 1), per_batch3),       # target ids
            pl.BlockSpec((bt, Lp, Dp), per_batch3),     # protein feats
        ]
        inputs = [ids, protein_feats]
        if mol_enable:
            _, Lm, Dm = molecule_feats.shape
            in_specs.append(pl.BlockSpec((bt, Lm, Dm), per_batch3))
            inputs.append(molecule_feats)
            mem_rows = Lp + Lm
        else:
            mem_rows = Lp

        # shared weights: constant index maps -> VMEM-resident across grid steps.
        weight_list = [(p["tok_emb"], (V, D)),
                       (p["prot_w"], (Dp, D)), (p["prot_b"], (1, D))]
        if mol_enable:
            weight_list += [(p["mol_w"], (self.Dm, D)), (p["mol_b"], (1, D))]
        weight_list += [(p["wq"], (D, D)), (p["wkv"], (D, 2 * D)),
                        (p["wo"], (D, D)), (p["wvoc"], (D, V)),
                        (p["bvoc"], (1, V))]
        for arr, shp in weight_list:
            in_specs.append(pl.BlockSpec(shp, shared))
            inputs.append(arr)

        # rough cost hint for XLA's scheduler
        lm_real = (mem_rows - Lp) if mol_enable else 0
        flops = 2 * B * (T * V * D + Lp * Dp * D + lm_real * self.Dm * D
                         + T * D * D + mem_rows * D * 2 * D
                         + 2 * T * mem_rows * D + T * D * D + T * D * V)
        bytes_accessed = (ids.size * 4 + protein_feats.size * 4
                          + (molecule_feats.size * 4 if mol_enable else 0)
                          + sum(int(a.size) * a.dtype.itemsize
                                for a, _ in weight_list)
                          + B * T * V * jnp.dtype(self.logits_dtype).itemsize)
        cost = pl.CostEstimate(flops=int(flops),
                               transcendentals=int(B * T * (mem_rows + 1)),
                               bytes_accessed=int(bytes_accessed))

        return pl.pallas_call(
            kernel,
            out_shape=jax.ShapeDtypeStruct((B, T, V), self.logits_dtype),
            grid_spec=pltpu.PrefetchScalarGridSpec(
                num_scalar_prefetch=0,
                grid=(B // bt,),
                in_specs=in_specs,
                out_specs=pl.BlockSpec((bt, T, V), per_batch3),
            ),
            compiler_params=pltpu.CompilerParams(
                dimension_semantics=("parallel",)),
            cost_estimate=cost,
        )(*inputs)


# ----------------------------------------------------------------------------
# Pure-JAX reference (same bf16-weight / f32-accumulation semantics)
# ----------------------------------------------------------------------------
def ref_forward(batch, params, configs):
    bf16, f32 = jnp.bfloat16, jnp.float32
    pe = dict(preferred_element_type=f32)
    prot = jnp.einsum("bld,de->ble", batch["protein_feats"].astype(bf16),
                      params["prot_w"].astype(bf16), **pe) + params["prot_b"]
    if configs.prot2token_model.molecule_encoder.enable:
        mol = jnp.einsum("bld,de->ble", batch["molecule_feats"].astype(bf16),
                         params["mol_w"].astype(bf16), **pe) + params["mol_b"]
    else:
        mol = jnp.zeros((prot.shape[0],
                         configs.prot2token_model.molecule_encoder.max_len,
                         prot.shape[-1]), f32)
    mem = jnp.concatenate([prot, mol], axis=1)
    tgt = jnp.take(params["tok_emb"].astype(bf16),
                   batch["target_input"], axis=0).astype(f32)
    D = params["wq"].shape[0]
    q = jnp.einsum("btd,de->bte", tgt.astype(bf16), params["wq"].astype(bf16), **pe)
    k = jnp.einsum("bmd,de->bme", mem.astype(bf16), params["wk"].astype(bf16), **pe)
    v = jnp.einsum("bmd,de->bme", mem.astype(bf16), params["wv"].astype(bf16), **pe)
    s = jnp.einsum("btd,bmd->btm", q.astype(bf16), k.astype(bf16), **pe) / math.sqrt(D)
    a = jax.nn.softmax(s, axis=-1)
    attn = jnp.einsum("btm,bmd->btd", a.astype(bf16), v.astype(bf16), **pe)
    h = tgt + jnp.einsum("btd,de->bte", attn.astype(bf16),
                         params["wo"].astype(bf16), **pe)
    return jnp.einsum("btd,dv->btv", h.astype(bf16),
                      params["wvoc"].astype(bf16), **pe) + params["bvoc"]


# ----------------------------------------------------------------------------
# main
# ----------------------------------------------------------------------------
if __name__ == "__main__":
    # small, deterministic, lane-aligned shapes
    B = 2            # batch
    Lp, Dp = 8, 128  # protein seq / feature dim
    Lm, Dm = 8, 128  # molecule seq / feature dim (== molecule_encoder.max_len)
    D = 128          # decoder hidden dim (lane-aligned)
    T = 8            # target sequence length
    V = 256          # vocab size (multiple of 128 -> lane-dense logits)

    key = jax.random.PRNGKey(0)
    ks = jax.random.split(key, 16)
    params = {
        "prot_w": jax.random.normal(ks[0], (Dp, D), jnp.float32) * 0.1,
        "prot_b": jax.random.normal(ks[1], (D,), jnp.float32) * 0.01,
        "mol_w": jax.random.normal(ks[2], (Dm, D), jnp.float32) * 0.1,
        "mol_b": jax.random.normal(ks[3], (D,), jnp.float32) * 0.01,
        "tok_emb": jax.random.normal(ks[4], (V, D), jnp.float32) * 0.1,
        "wq": jax.random.normal(ks[5], (D, D), jnp.float32) * 0.1,
        "wk": jax.random.normal(ks[6], (D, D), jnp.float32) * 0.1,
        "wv": jax.random.normal(ks[7], (D, D), jnp.float32) * 0.1,
        "wo": jax.random.normal(ks[8], (D, D), jnp.float32) * 0.1,
        "wvoc": jax.random.normal(ks[9], (D, V), jnp.float32) * 0.1,
        "bvoc": jax.random.normal(ks[10], (V,), jnp.float32) * 0.01,
    }
    batch = {
        "protein_feats": jax.random.normal(ks[11], (B, Lp, Dp), jnp.float32),
        "molecule_feats": jax.random.normal(ks[12], (B, Lm, Dm), jnp.float32),
        "target_input": jax.random.randint(ks[13], (B, T), 0, V, jnp.int32),
    }

    # molecule encoder enabled
    configs_on = SimpleNamespace(prot2token_model=SimpleNamespace(
        molecule_encoder=SimpleNamespace(enable=True, max_len=Lm)))
    model = EncoderDecoderPallas(params, configs_on)
    preds = jax.block_until_ready(model(batch))
    assert preds.shape == (B, T, V)
    r = ref_forward(batch, params, configs_on)
    assert float(jnp.max(jnp.abs(preds - r))) < 2e-2, "mismatch vs reference (enabled)"

    # molecule encoder disabled -> dummy (zero) representation branch
    # (molecule feats / weights are not even passed to the kernel)
    configs_off = SimpleNamespace(prot2token_model=SimpleNamespace(
        molecule_encoder=SimpleNamespace(enable=False, max_len=Lm)))
    model_off = EncoderDecoderPallas(params, configs_off)
    preds_off = jax.block_until_ready(model_off(batch))
    r_off = ref_forward(batch, params, configs_off)
    assert float(jnp.max(jnp.abs(preds_off - r_off))) < 2e-2, "mismatch vs reference (disabled)"

    print("KERNEL_OK")
</pallas_src>

<mosaic_0001>
module attributes {stable_mosaic.version = 11 : i64} {
  func.func @_fused_encdec_kernel(%arg0: i32, %arg1: memref<2x8x1xi32, #tpu.memory_space<vmem>>, %arg2: memref<2x8x128xf32, #tpu.memory_space<vmem>>, %arg3: memref<2x8x128xf32, #tpu.memory_space<vmem>>, %arg4: memref<256x128xbf16, #tpu.memory_space<vmem>>, %arg5: memref<128x128xbf16, #tpu.memory_space<vmem>>, %arg6: memref<1x128xf32, #tpu.memory_space<vmem>>, %arg7: memref<128x128xbf16, #tpu.memory_space<vmem>>, %arg8: memref<1x128xf32, #tpu.memory_space<vmem>>, %arg9: memref<128x128xbf16, #tpu.memory_space<vmem>>, %arg10: memref<128x256xbf16, #tpu.memory_space<vmem>>, %arg11: memref<128x128xbf16, #tpu.memory_space<vmem>>, %arg12: memref<128x256xbf16, #tpu.memory_space<vmem>>, %arg13: memref<1x256xf32, #tpu.memory_space<vmem>>, %arg14: memref<2x8x256xf32, #tpu.memory_space<vmem>>) attributes {dimension_semantics = [#tpu.dimension_semantics<parallel>], iteration_bounds = array<i64: 1>, scalar_prefetch = 0 : i64, scratch_operands = 0 : i64, tpu.core_type = #tpu.core_type<tc>, window_params = [{transform_indices = @transform_0, window_bounds = array<i64: 2, 8, 1>}, {transform_indices = @transform_1, window_bounds = array<i64: 2, 8, 128>}, {transform_indices = @transform_2, window_bounds = array<i64: 2, 8, 128>}, {pipeline_mode = #tpu.pipeline_mode<synchronous>, transform_indices = @transform_3, window_bounds = array<i64: 256, 128>}, {pipeline_mode = #tpu.pipeline_mode<synchronous>, transform_indices = @transform_4, window_bounds = array<i64: 128, 128>}, {pipeline_mode = #tpu.pipeline_mode<synchronous>, transform_indices = @transform_5, window_bounds = array<i64: 1, 128>}, {pipeline_mode = #tpu.pipeline_mode<synchronous>, transform_indices = @transform_6, window_bounds = array<i64: 128, 128>}, {pipeline_mode = #tpu.pipeline_mode<synchronous>, transform_indices = @transform_7, window_bounds = array<i64: 1, 128>}, {pipeline_mode = #tpu.pipeline_mode<synchronous>, transform_indices = @transform_8, window_bounds = array<i64: 128, 128>}, {pipeline_mode = #tpu.pipeline_mode<synchronous>, transform_indices = @transform_9, window_bounds = array<i64: 128, 256>}, {pipeline_mode = #tpu.pipeline_mode<synchronous>, transform_indices = @transform_10, window_bounds = array<i64: 128, 128>}, {pipeline_mode = #tpu.pipeline_mode<synchronous>, transform_indices = @transform_11, window_bounds = array<i64: 128, 256>}, {pipeline_mode = #tpu.pipeline_mode<synchronous>, transform_indices = @transform_12, window_bounds = array<i64: 1, 256>}, {transform_indices = @transform_13, window_bounds = array<i64: 2, 8, 256>}]} {
    %c0 = arith.constant 0 : index
    %c0_0 = arith.constant 0 : index
    %c0_1 = arith.constant 0 : index
    %0 = vector.load %arg1[%c0, %c0_0, %c0_1] : memref<2x8x1xi32, #tpu.memory_space<vmem>>, vector<2x8x1xi32>
    %1 = tpu.iota {dimensions = array<i32: 2>} : vector<2x8x256xi32>
    %2 = vector.broadcast %0 : vector<2x8x1xi32> to vector<2x8x256xi32>
    %3 = arith.cmpi eq, %1, %2 : vector<2x8x256xi32>
    %4 = arith.extui %3 : vector<2x8x256xi1> to vector<2x8x256xi32>
    %5 = arith.sitofp %4 : vector<2x8x256xi32> to vector<2x8x256xf32>
    %6 = arith.truncf %5 : vector<2x8x256xf32> to vector<2x8x256xbf16>
    %7 = vector.shape_cast %6 : vector<2x8x256xbf16> to vector<16x256xbf16>
    %c0_2 = arith.constant 0 : index
    %c0_3 = arith.constant 0 : index
    %8 = vector.load %arg4[%c0_2, %c0_3] : memref<256x128xbf16, #tpu.memory_space<vmem>>, vector<256x128xbf16>
    %cst = arith.constant dense<0.000000e+00> : vector<16x128xf32>
    %9 = tpu.matmul %7, %8, %cst {dimension_numbers = #tpu.dot_dimension_numbers<[1], [0], [0], [1], [0, 0, 1, 1], [], []>} : vector<16x256xbf16>, vector<256x128xbf16>, vector<16x128xf32> -> vector<16x128xf32>
    %c0_4 = arith.constant 0 : index
    %c0_5 = arith.constant 0 : index
    %c0_6 = arith.constant 0 : index
    %10 = vector.load %arg2[%c0_4, %c0_5, %c0_6] : memref<2x8x128xf32, #tpu.memory_space<vmem>>, vector<2x8x128xf32>
    %11 = vector.shape_cast %10 : vector<2x8x128xf32> to vector<16x128xf32>
    %12 = arith.truncf %11 : vector<16x128xf32> to vector<16x128xbf16>
    %c0_7 = arith.constant 0 : index
    %c0_8 = arith.constant 0 : index
    %13 = vector.load %arg5[%c0_7, %c0_8] : memref<128x128xbf16, #tpu.memory_space<vmem>>, vector<128x128xbf16>
    %cst_9 = arith.constant dense<0.000000e+00> : vector<16x128xf32>
    %14 = tpu.matmul %12, %13, %cst_9 {dimension_numbers = #tpu.dot_dimension_numbers<[1], [0], [0], [1], [0, 0, 1, 1], [], []>} : vector<16x128xbf16>, vector<128x128xbf16>, vector<16x128xf32> -> vector<16x128xf32>
    %c0_10 = arith.constant 0 : index
    %c0_11 = arith.constant 0 : index
    %15 = vector.load %arg6[%c0_10, %c0_11] : memref<1x128xf32, #tpu.memory_space<vmem>>, vector<1x128xf32>
    %16 = vector.broadcast %15 : vector<1x128xf32> to vector<16x128xf32>
    %17 = arith.addf %14, %16 : vector<16x128xf32>
    %c0_12 = arith.constant 0 : index
    %c0_13 = arith.constant 0 : index
    %c0_14 = arith.constant 0 : index
    %18 = vector.load %arg3[%c0_12, %c0_13, %c0_14] : memref<2x8x128xf32, #tpu.memory_space<vmem>>, vector<2x8x128xf32>
    %19 = vector.shape_cast %18 : vector<2x8x128xf32> to vector<16x128xf32>
    %20 = arith.truncf %19 : vector<16x128xf32> to vector<16x128xbf16>
    %c0_15 = arith.constant 0 : index
    %c0_16 = arith.constant 0 : index
    %21 = vector.load %arg7[%c0_15, %c0_16] : memref<128x128xbf16, #tpu.memory_space<vmem>>, vector<128x128xbf16>
    %cst_17 = arith.constant dense<0.000000e+00> : vector<16x128xf32>
    %22 = tpu.matmul %20, %21, %cst_17 {dimension_numbers = #tpu.dot_dimension_numbers<[1], [0], [0], [1], [0, 0, 1, 1], [], []>} : vector<16x128xbf16>, vector<128x128xbf16>, vector<16x128xf32> -> vector<16x128xf32>
    %c0_18 = arith.constant 0 : index
    %c0_19 = arith.constant 0 : index
    %23 = vector.load %arg8[%c0_18, %c0_19] : memref<1x128xf32, #tpu.memory_space<vmem>>, vector<1x128xf32>
    %24 = vector.broadcast %23 : vector<1x128xf32> to vector<16x128xf32>
    %25 = arith.addf %22, %24 : vector<16x128xf32>
    %26 = vector.shape_cast %17 : vector<16x128xf32> to vector<2x8x128xf32>
    %27 = vector.shape_cast %25 : vector<16x128xf32> to vector<2x8x128xf32>
    %28 = tpu.concatenate %26, %27 in 1 : vector<2x8x128xf32>, vector<2x8x128xf32> -> vector<2x16x128xf32>
    %29 = arith.truncf %9 : vector<16x128xf32> to vector<16x128xbf16>
    %c0_20 = arith.constant 0 : index
    %c0_21 = arith.constant 0 : index
    %30 = vector.load %arg9[%c0_20, %c0_21] : memref<128x128xbf16, #tpu.memory_space<vmem>>, vector<128x128xbf16>
    %cst_22 = arith.constant dense<0.000000e+00> : vector<16x128xf32>
    %31 = tpu.matmul %29, %30, %cst_22 {dimension_numbers = #tpu.dot_dimension_numbers<[1], [0], [0], [1], [0, 0, 1, 1], [], []>} : vector<16x128xbf16>, vector<128x128xbf16>, vector<16x128xf32> -> vector<16x128xf32>
    %32 = vector.shape_cast %31 : vector<16x128xf32> to vector<2x8x128xf32>
    %33 = vector.shape_cast %28 : vector<2x16x128xf32> to vector<32x128xf32>
    %34 = arith.truncf %33 : vector<32x128xf32> to vector<32x128xbf16>
    %c0_23 = arith.constant 0 : index
    %c0_24 = arith.constant 0 : index
    %35 = vector.load %arg10[%c0_23, %c0_24] : memref<128x256xbf16, #tpu.memory_space<vmem>>, vector<128x256xbf16>
    %cst_25 = arith.constant dense<0.000000e+00> : vector<32x256xf32>
    %36 = tpu.matmul %34, %35, %cst_25 {dimension_numbers = #tpu.dot_dimension_numbers<[1], [0], [0], [1], [0, 0, 1, 1], [], []>} : vector<32x128xbf16>, vector<128x256xbf16>, vector<32x256xf32> -> vector<32x256xf32>
    %37 = vector.extract_strided_slice %36 {offsets = [0, 0], sizes = [32, 128], strides = [1, 1]} : vector<32x256xf32> to vector<32x128xf32>
    %38 = vector.shape_cast %37 : vector<32x128xf32> to vector<2x16x128xf32>
    %39 = vector.extract_strided_slice %36 {offsets = [0, 128], sizes = [32, 128], strides = [1, 1]} : vector<32x256xf32> to vector<32x128xf32>
    %40 = vector.shape_cast %39 : vector<32x128xf32> to vector<2x16x128xf32>
    %41 = arith.truncf %32 : vector<2x8x128xf32> to vector<2x8x128xbf16>
    %42 = arith.truncf %38 : vector<2x16x128xf32> to vector<2x16x128xbf16>
    "tpu.trace_start"() <{level = 10 : i32, message = "bqd,bkd->bqk"}> : () -> ()
    %cst_26 = arith.constant dense<0.000000e+00> : vector<2x8x16xf32>
    %43 = tpu.matmul %41, %42, %cst_26 {dimension_numbers = #tpu.dot_dimension_numbers<[2], [2], [1], [1], [0, 0, 0, 1, 1, 1], [0], [0]>} : vector<2x8x128xbf16>, vector<2x16x128xbf16>, vector<2x8x16xf32> -> vector<2x8x16xf32>
    "tpu.trace_stop"() : () -> ()
    %cst_27 = arith.constant dense<0xFF800000> : vector<2x8xf32>
    %44 = vector.multi_reduction <maximumf>, %43, %cst_27 [2] : vector<2x8x16xf32> to vector<2x8xf32>
    %45 = vector.shape_cast %44 : vector<2x8xf32> to vector<2x8x1xf32>
    %46 = vector.broadcast %45 : vector<2x8x1xf32> to vector<2x8x16xf32>
    %47 = arith.subf %43, %46 : vector<2x8x16xf32>
    %48 = math.exp %47 : vector<2x8x16xf32>
    %cst_28 = arith.constant dense<0.000000e+00> : vector<2x8xf32>
    %49 = vector.multi_reduction <add>, %48, %cst_28 [2] : vector<2x8x16xf32> to vector<2x8xf32>
    %50 = vector.shape_cast %49 : vector<2x8xf32> to vector<2x8x1xf32>
    %51 = tpu.reciprocal %50 {approx = true} : vector<2x8x1xf32> -> vector<2x8x1xf32>
    %52 = vector.broadcast %51 : vector<2x8x1xf32> to vector<2x8x16xf32>
    %53 = arith.mulf %48, %52 : vector<2x8x16xf32>
    %54 = arith.truncf %53 : vector<2x8x16xf32> to vector<2x8x16xbf16>
    %55 = arith.truncf %40 : vector<2x16x128xf32> to vector<2x16x128xbf16>
    "tpu.trace_start"() <{level = 10 : i32, message = "bqk,bkd->bqd"}> : () -> ()
    %cst_29 = arith.constant dense<0.000000e+00> : vector<2x8x128xf32>
    %56 = tpu.matmul %54, %55, %cst_29 {dimension_numbers = #tpu.dot_dimension_numbers<[2], [1], [1], [2], [0, 0, 0, 1, 1, 2], [0], [0]>} : vector<2x8x16xbf16>, vector<2x16x128xbf16>, vector<2x8x128xf32> -> vector<2x8x128xf32>
    "tpu.trace_stop"() : () -> ()
    %57 = vector.shape_cast %56 : vector<2x8x128xf32> to vector<16x128xf32>
    %58 = arith.truncf %57 : vector<16x128xf32> to vector<16x128xbf16>
    %c0_30 = arith.constant 0 : index
    %c0_31 = arith.constant 0 : index
    %59 = vector.load %arg11[%c0_30, %c0_31] : memref<128x128xbf16, #tpu.memory_space<vmem>>, vector<128x128xbf16>
    %cst_32 = arith.constant dense<0.000000e+00> : vector<16x128xf32>
    %60 = tpu.matmul %58, %59, %cst_32 {dimension_numbers = #tpu.dot_dimension_numbers<[1], [0], [0], [1], [0, 0, 1, 1], [], []>} : vector<16x128xbf16>, vector<128x128xbf16>, vector<16x128xf32> -> vector<16x128xf32>
    %61 = arith.addf %9, %60 : vector<16x128xf32>
    %62 = arith.truncf %61 : vector<16x128xf32> to vector<16x128xbf16>
    %c0_33 = arith.constant 0 : index
    %c0_34 = arith.constant 0 : index
    %63 = vector.load %arg12[%c0_33, %c0_34] : memref<128x256xbf16, #tpu.memory_space<vmem>>, vector<128x256xbf16>
    %cst_35 = arith.constant dense<0.000000e+00> : vector<16x256xf32>
    %64 = tpu.matmul %62, %63, %cst_35 {dimension_numbers = #tpu.dot_dimension_numbers<[1], [0], [0], [1], [0, 0, 1, 1], [], []>} : vector<16x128xbf16>, vector<128x256xbf16>, vector<16x256xf32> -> vector<16x256xf32>
    %c0_36 = arith.constant 0 : index
    %c0_37 = arith.constant 0 : index
    %65 = vector.load %arg13[%c0_36, %c0_37] : memref<1x256xf32, #tpu.memory_space<vmem>>, vector<1x256xf32>
    %66 = vector.broadcast %65 : vector<1x256xf32> to vector<16x256xf32>
    %67 = arith.addf %64, %66 : vector<16x256xf32>
    %68 = vector.shape_cast %67 : vector<16x256xf32> to vector<2x8x256xf32>
    %c0_38 = arith.constant 0 : index
    %c0_39 = arith.constant 0 : index
    %c0_40 = arith.constant 0 : index
    %69 = vector.load %arg14[%c0_38, %c0_39, %c0_40] : memref<2x8x256xf32, #tpu.memory_space<vmem>>, vector<2x8x256xf32>
    tpu.vector_store %arg14[%c0_38, %c0_39, %c0_40], %68 {strides = array<i32>} : memref<2x8x256xf32, #tpu.memory_space<vmem>>, vector<2x8x256xf32>,
    return
  }
  func.func @transform_0(%arg0: i32) -> (i32, i32, i32) {
    %c0_i32 = arith.constant 0 : i32
    %c0_i32_0 = arith.constant 0 : i32
    %c0_i32_1 = arith.constant 0 : i32
    return %arg0, %c0_i32, %c0_i32_0 : i32, i32, i32
  }
  func.func @transform_1(%arg0: i32) -> (i32, i32, i32) {
    %c0_i32 = arith.constant 0 : i32
    %c0_i32_0 = arith.constant 0 : i32
    %c0_i32_1 = arith.constant 0 : i32
    return %arg0, %c0_i32, %c0_i32_0 : i32, i32, i32
  }
  func.func @transform_2(%arg0: i32) -> (i32, i32, i32) {
    %c0_i32 = arith.constant 0 : i32
    %c0_i32_0 = arith.constant 0 : i32
    %c0_i32_1 = arith.constant 0 : i32
    return %arg0, %c0_i32, %c0_i32_0 : i32, i32, i32
  }
  func.func @transform_3(%arg0: i32) -> (i32, i32) {
    %c0_i32 = arith.constant 0 : i32
    %c0_i32_0 = arith.constant 0 : i32
    %c0_i32_1 = arith.constant 0 : i32
    return %c0_i32, %c0_i32_0 : i32, i32
  }
  func.func @transform_4(%arg0: i32) -> (i32, i32) {
    %c0_i32 = arith.constant 0 : i32
    %c0_i32_0 = arith.constant 0 : i32
    %c0_i32_1 = arith.constant 0 : i32
    return %c0_i32, %c0_i32_0 : i32, i32
  }
  func.func @transform_5(%arg0: i32) -> (i32, i32) {
    %c0_i32 = arith.constant 0 : i32
    %c0_i32_0 = arith.constant 0 : i32
    %c0_i32_1 = arith.constant 0 : i32
    return %c0_i32, %c0_i32_0 : i32, i32
  }
  func.func @transform_6(%arg0: i32) -> (i32, i32) {
    %c0_i32 = arith.constant 0 : i32
    %c0_i32_0 = arith.constant 0 : i32
    %c0_i32_1 = arith.constant 0 : i32
    return %c0_i32, %c0_i32_0 : i32, i32
  }
  func.func @transform_7(%arg0: i32) -> (i32, i32) {
    %c0_i32 = arith.constant 0 : i32
    %c0_i32_0 = arith.constant 0 : i32
    %c0_i32_1 = arith.constant 0 : i32
    return %c0_i32, %c0_i32_0 : i32, i32
  }
  func.func @transform_8(%arg0: i32) -> (i32, i32) {
    %c0_i32 = arith.constant 0 : i32
    %c0_i32_0 = arith.constant 0 : i32
    %c0_i32_1 = arith.constant 0 : i32
    return %c0_i32, %c0_i32_0 : i32, i32
  }
  func.func @transform_9(%arg0: i32) -> (i32, i32) {
    %c0_i32 = arith.constant 0 : i32
    %c0_i32_0 = arith.constant 0 : i32
    %c0_i32_1 = arith.constant 0 : i32
    return %c0_i32, %c0_i32_0 : i32, i32
  }
  func.func @transform_10(%arg0: i32) -> (i32, i32) {
    %c0_i32 = arith.constant 0 : i32
    %c0_i32_0 = arith.constant 0 : i32
    %c0_i32_1 = arith.constant 0 : i32
    return %c0_i32, %c0_i32_0 : i32, i32
  }
  func.func @transform_11(%arg0: i32) -> (i32, i32) {
    %c0_i32 = arith.constant 0 : i32
    %c0_i32_0 = arith.constant 0 : i32
    %c0_i32_1 = arith.constant 0 : i32
    return %c0_i32, %c0_i32_0 : i32, i32
  }
  func.func @transform_12(%arg0: i32) -> (i32, i32) {
    %c0_i32 = arith.constant 0 : i32
    %c0_i32_0 = arith.constant 0 : i32
    %c0_i32_1 = arith.constant 0 : i32
    return %c0_i32, %c0_i32_0 : i32, i32
  }
  func.func @transform_13(%arg0: i32) -> (i32, i32, i32) {
    %c0_i32 = arith.constant 0 : i32
    %c0_i32_0 = arith.constant 0 : i32
    %c0_i32_1 = arith.constant 0 : i32
    return %arg0, %c0_i32, %c0_i32_0 : i32, i32, i32
  }
}

</mosaic_0001>

<bundles_post_ra>
// kernel: tpu_custom_call.1
= control target key start
LH: loop header
LB: loop body
LE: loop exit
PB: predicated region body
PF: predicated region fallthrough
CT: control target
= control target key end

     0   :  { %18 = vsyncpa [#allocation3], 0  ;;  %s1938_s0 = inlined_call_operand.vmem [shape: s32[2,8,1], index: 0, kind: input, shape index: {}]   ;;  %s1939_s1 = inlined_call_operand.vmem [shape: f32[2,8,128], index: 1, kind: input, shape index: {}]   ;;  %s1940_s2 = inlined_call_operand.hbm [shape: f32[2,8,128], index: 2, kind: input, shape index: {}]   ;;  %s1941_s3 = inlined_call_operand.hbm [shape: bf16[256,128], index: 3, kind: input, shape index: {}]   ;;  %s1942_s4 = inlined_call_operand.hbm [shape: bf16[128,128], index: 4, kind: input, shape index: {}]   ;;  %s1943_s5 = inlined_call_operand.vmem [shape: f32[1,128], index: 5, kind: input, shape index: {}]   ;;  %s1944_s6 = inlined_call_operand.hbm [shape: bf16[128,128], index: 6, kind: input, shape index: {}]   ;;  %s1945_s7 = inlined_call_operand.vmem [shape: f32[1,128], index: 7, kind: input, shape index: {}]   ;;  %s1946_s8 = inlined_call_operand.hbm [shape: bf16[128,128], index: 8, kind: input, shape index: {}]   ;;  %s1947_s9 = inlined_call_operand.hbm [shape: bf16[128,256], index: 9, kind: input, shape index: {}]   ;;  %s1948_s10 = inlined_call_operand.hbm [shape: bf16[128,128], index: 10, kind: input, shape index: {}]   ;;  %s1949_s11 = inlined_call_operand.hbm [shape: bf16[128,256], index: 11, kind: input, shape index: {}]   ;;  %s1950_s12 = inlined_call_operand.vmem [shape: f32[1,256], index: 12, kind: input, shape index: {}]   ;;  %s1951_s13 = inlined_call_operand.hbm [shape: f32[2,8,256], index: 13, kind: output, shape index: {}]  }
   0x1   :  { %19 = vsyncpa [#allocation6], 0 }
   0x2   :  { %20 = vsyncpa [#allocation9], 0 }
   0x3   :  { %21 = vsyncpa [#allocation12], 0 }
   0x4   :  { %22 = vsyncpa [#allocation15], 0  ;;  %s45_s27 = sshll.u32 %s1941_s3, 4  ;;  %s46_s27 = int_to_ptr.hbm [resolvable:$true] %s45_s27 }
   0x5   :  { %23 = vsyncpa [#allocation4], 0  ;;  %s1765_s28 = smov [#allocation5]   ;;  %s73_s15 = sshll.u32 %s1944_s6, 4  ;;  %s74_s15 = int_to_ptr.hbm [resolvable:$true] %s73_s15 }
   0x6   :  { %s47_s29 = sshll.u32 %s1765_s28, 4  ;;  %s1766_s16 = smov 64   ;;  %s48_s29 = int_to_ptr.vmem [resolvable:$true] %s47_s29 }
   0x7   :  { %s1767_s17 = smov 4   ;;  %s1768_s18 = smov [#allocation8]  }
   0x8   :  { %53 = dma.hbm_to_vmem [thread:$0]  %s46_s27, 2048, %s48_s29, [#allocation6], %s1766_s16, %s1766_s16, %s1767_s17  }
   0x9   :  { %s75_s19 = sshll.u32 %s1768_s18, 4  ;;  %s101_s21 = sshll.u32 %s1947_s9, 4  ;;  %s76_s19 = int_to_ptr.vmem [resolvable:$true] %s75_s19  ;;  %s102_s21 = int_to_ptr.hbm [resolvable:$true] %s101_s21 }
   0xa   :  { %81 = dma.hbm_to_vmem [thread:$0]  %s74_s15, 1024, %s76_s19, [#allocation9], %s1766_s16, %s1766_s16, %s1767_s17  }
   0xb   :  { %s1769_s6 = smov [#allocation11]   ;;  %s32_s25 = sshll.u32 %s1940_s2, 4  ;;  %s33_s25 = int_to_ptr.hbm [resolvable:$true] %s32_s25 }
   0xc   :  { %s103_s22 = sshll.u32 %s1769_s6, 4  ;;  %s1770_s26 = smov 128   ;;  %s104_s22 = int_to_ptr.vmem [resolvable:$true] %s103_s22 }
   0xd   :  { %s1771_s27 = smov 8   ;;  %s1772_s28 = smov [#allocation2]  }
   0xe   :  { %109 = dma.hbm_to_vmem [thread:$0]  %s102_s21, 2048, %s104_s22, [#allocation12], %s1770_s26, %s1770_s26, %s1771_s27  }
   0xf   :  { %s34_s29 = sshll.u32 %s1772_s28, 4  ;;  %s58_s9 = sshll.u32 %s1942_s4, 4  ;;  %s35_s29 = int_to_ptr.vmem [resolvable:$true] %s34_s29  ;;  %s59_s9 = int_to_ptr.hbm [resolvable:$true] %s58_s9 }
  0x10   :  { %40 = dma.hbm_to_vmem [thread:$0]  %s33_s25, 256, %s35_s29, [#allocation3], %s1770_s26, %s1770_s26, %s1771_s27  }
  0x11   :  { %s88_s18 = sshll.u32 %s1946_s8, 4  ;;  %s1773_s19 = smov [#allocation7]   ;;  %s89_s18 = int_to_ptr.hbm [resolvable:$true] %s88_s18 }
  0x12   :  { %s60_s3 = sshll.u32 %s1773_s19, 4  ;;  %s1774_s20 = smov [#allocation10]   ;;  %s61_s3 = int_to_ptr.vmem [resolvable:$true] %s60_s3 }
  0x13   :  { %66 = dma.hbm_to_vmem [thread:$0]  %s59_s9, 1024, %s61_s3, [#allocation6], %s1766_s16, %s1766_s16, %s1767_s17  }
  0x14   :  { %s90_s4 = sshll.u32 %s1774_s20, 4  ;;  %s114_s22 = sshll.u32 %s1948_s10, 4  ;;  %s91_s4 = int_to_ptr.vmem [resolvable:$true] %s90_s4  ;;  %s115_s22 = int_to_ptr.hbm [resolvable:$true] %s114_s22 }
  0x15   :  { %96 = dma.hbm_to_vmem [thread:$0]  %s89_s18, 1024, %s91_s4, [#allocation9], %s1766_s16, %s1766_s16, %s1767_s17  }
  0x16   :  { %s127_s24 = sshll.u32 %s1949_s11, 4  ;;  %s1775_s25 = smov [#allocation13]   ;;  %s128_s24 = int_to_ptr.hbm [resolvable:$true] %s127_s24 }
  0x17   :  { %s116_s28 = sshll.u32 %s1775_s25, 4  ;;  %s1776_s29 = smov [#allocation14]   ;;  %s117_s28 = int_to_ptr.vmem [resolvable:$true] %s116_s28 }
  0x18   :  { %122 = dma.hbm_to_vmem [thread:$0]  %s115_s22, 1024, %s117_s28, [#allocation12], %s1766_s16, %s1766_s16, %s1767_s17  }
  0x19   :  { %s129_s10 = sshll.u32 %s1776_s29, 4  ;;  %s130_s10 = int_to_ptr.vmem [resolvable:$true] %s129_s10 }
  0x1a   :  { %135 = dma.hbm_to_vmem [thread:$0]  %s128_s24, 2048, %s130_s10, [#allocation15], %s1770_s26, %s1770_s26, %s1771_s27  }
  0x1b   :  { %1753 = dma.done.wait [#allocation3], 256  }
  0x1c   :  { %1754 = vsyncadd [#allocation3], 4294967040 }
  0x1d   :  { %1755 = dma.done.wait [#allocation6], 3072  }
  0x1e   :  { %1756 = vsyncadd [#allocation6], 4294964224 }
  0x1f   :  { %1757 = dma.done.wait [#allocation9], 2048  }
  0x20   :  { %1758 = vsyncadd [#allocation9], 4294965248 }
  0x21   :  { %1759 = dma.done.wait [#allocation12], 3072  }
  0x22   :  { %1760 = vsyncadd [#allocation12], 4294964224 }
  0x23   :  { %1761 = dma.done.wait [#allocation15], 2048  }
  0x24   :  { %1762 = vsyncadd [#allocation15], 4294965248  ;;  %v1777_v0 = vmov 0   ;;  %v171_v1 = vld [vmem:[%s1938_s0] sm:$0xff]  ;;  %v1452_v2 = vld [vmem:[#allocation7 + $0x38] sm:$0xff]  ;;  %v173_v57 = vlaneseq  ;;  %vm791_vm4 = vcmask 130048  }
  0x25   :  { %1526 = vset.pattern.permute.xlu0 %v1777_v0  ;;  %v1460_v3 = vld [vmem:[#allocation8 + $0x38] sm:$0xff]  ;;  %433 = vmatpush.bf16.msra.mxu2 %v1452_v2  ;;  %v1451_v4 = vld [vmem:[#allocation7 + $0x30] sm:$0xff]  ;;  %v1450_v7 = vld [vmem:[#allocation7 + $0x28] sm:$0xff]  ;;  %s1779_s18 = smov [#allocation16]   ;;  %s1086_s4 = sshll.u32 %s1951_s13, 4  ;;  %s1087_s4 = int_to_ptr.hbm [resolvable:$true] %s1086_s4 }
  0x26   :  { %177 = vperm.xlu0 %1526, %v171_v1   ;;  %518 = vmatpush.bf16.msra.mxu3 %v1460_v3  ;;  %v1459_v5 = vld [vmem:[#allocation8 + $0x30] sm:$0xff]  ;;  %v172_v6 = vld [vmem:[%s1938_s0 + $0x8] sm:$0xff]  ;;  %v1458_v8 = vld [vmem:[#allocation8 + $0x28] sm:$0xff]  ;;  %v174_v0 = vand.u32 127, %v173_v57  ;;  %s1084_s19 = sshll.u32 %s1779_s18, 4  ;;  %s1781_s21 = smov 16   ;;  %s1085_s19 = int_to_ptr.vmem [resolvable:$true] %s1084_s19 }
  0x27   :  { %v1436_v9 = vld [vmem:[#allocation5 + $0x38] sm:$0xff]  ;;  %v1449_v11 = vld [vmem:[#allocation7 + $0x20] sm:$0xff]  ;;  %v1435_v12 = vld [vmem:[#allocation5 + $0x30] sm:$0xff] }
  0x28   :  { %v1444_v10 = vld [vmem:[#allocation5 + $0x78] sm:$0xff]  ;;  %334 = vmatpush.bf16.msra.mxu0 %v1436_v9  ;;  %v1443_v13 = vld [vmem:[#allocation5 + $0x70] sm:$0xff]  ;;  %v1457_v14 = vld [vmem:[#allocation8 + $0x20] sm:$0xff] }
  0x29   :  { %434 = vmatpush.bf16.msra.mxu2 %v1451_v4  ;;  %348 = vmatpush.bf16.msra.mxu1 %v1444_v10  ;;  %v1434_v15 = vld [vmem:[#allocation5 + $0x28] sm:$0xff]  ;;  %v1448_v16 = vld [vmem:[#allocation7 + $0x18] sm:$0xff]  ;;  %v1433_v19 = vld [vmem:[#allocation5 + $0x20] sm:$0xff] }
  0x2a   :  { %519 = vmatpush.bf16.msra.mxu3 %v1459_v5  ;;  %v1442_v17 = vld [vmem:[#allocation5 + $0x68] sm:$0xff]  ;;  %v1456_v18 = vld [vmem:[#allocation8 + $0x18] sm:$0xff]  ;;  %v1447_v20 = vld [vmem:[#allocation7 + $0x10] sm:$0xff] }
  0x2b   :  { %v1441_v21 = vld [vmem:[#allocation5 + $0x60] sm:$0xff]  ;;  %v1455_v22 = vld [vmem:[#allocation8 + $0x10] sm:$0xff]  ;;  %v1446_v23 = vld [vmem:[#allocation7 + $0x8] sm:$0xff] }
  0x2c   :  { %335 = vmatpush.bf16.msra.mxu0 %v1435_v12  ;;  %v1454_v24 = vld [vmem:[#allocation8 + $0x8] sm:$0xff]  ;;  %v1445_v25 = vld [vmem:[#allocation7] sm:$0xff]  ;;  %v362_v26 = vld [vmem:[%s1939_s1] sm:$0xff] }
  0x2d   :  { %435 = vmatpush.bf16.msra.mxu2 %v1450_v7  ;;  %349 = vmatpush.bf16.msra.mxu1 %v1443_v13  ;;  %v363_v27 = vld [vmem:[%s1939_s1 + $0x8] sm:$0xff]  ;;  %v1453_v28 = vld [vmem:[#allocation8] sm:$0xff]  ;;  %v447_v29 = vld [vmem:[#allocation2] sm:$0xff]  ;;  %v175_v7 = vadd.s32 128, %v174_v0 }
  0x2e   :  { %180 = vperm.xlu0 %1526, %v172_v6   ;;  %520 = vmatpush.bf16.msra.mxu3 %v1458_v8  ;;  %v448_v30 = vld [vmem:[#allocation2 + $0x8] sm:$0xff]  ;;  %v364_v31 = vpack.c.bf16 %v363_v27, %v362_v26  ;;  %v1431_v35 = vld [vmem:[#allocation5 + $0x10] sm:$0xff]  ;;  %v1430_v37 = vld [vmem:[#allocation5 + $0x8] sm:$0xff] }
  0x2f   :  { %v449_v32 = vpack.c.bf16 %v448_v30, %v447_v29  ;;  %v1432_v33 = vld [vmem:[#allocation5 + $0x18] sm:$0xff]  ;;  %v1439_v36 = vld [vmem:[#allocation5 + $0x50] sm:$0xff]  ;;  %v1438_v38 = vld [vmem:[#allocation5 + $0x48] sm:$0xff] }
  0x30   :  { %336 = vmatpush.bf16.msra.mxu0 %v1434_v15  ;;  %v1440_v34 = vld [vmem:[#allocation5 + $0x58] sm:$0xff]  ;;  %v1429_v39 = vld [vmem:[#allocation5] sm:$0xff]  ;;  %v1325_v41 = vld [vmem:[#allocation11 + $0x70] sm:$0xf] }
  0x31   :  { %436 = vmatpush.bf16.msra.mxu2 %v1449_v11  ;;  %350 = vmatpush.bf16.msra.mxu1 %v1442_v17  ;;  %v1437_v40 = vld [vmem:[#allocation5 + $0x40] sm:$0xff]  ;;  %v1484_v42 = vld [vmem:[#allocation11 + $0x74] sm:$0xf0]  ;;  %v1483_v43 = vld [vmem:[#allocation11 + $0x74] sm:$0xf] }
  0x32   :  { %521 = vmatpush.bf16.msra.mxu3 %v1457_v14  ;;  %v1326_v44 = vor.u32 %v1484_v42, %v1325_v41  ;;  %v1327_v45 = vld [vmem:[#allocation11 + $0x78] sm:$0xf0]  ;;  %v1317_v46 = vld [vmem:[#allocation11 + $0x60] sm:$0xf]  ;;  %v1482_v47 = vld [vmem:[#allocation11 + $0x64] sm:$0xf0] }
  0x33   :  { %v1330_v48 = vor.u32 %v1483_v43, %v1327_v45  ;;  %v1481_v49 = vld [vmem:[#allocation11 + $0x64] sm:$0xf]  ;;  %v1319_v50 = vld [vmem:[#allocation11 + $0x68] sm:$0xf0]  ;;  %v1318_v51 = vor.u32 %v1482_v47, %v1317_v46  ;;  %v1309_v53 = vld [vmem:[#allocation11 + $0x50] sm:$0xf] }
  0x34   :  { %337 = vmatpush.bf16.msra.mxu0 %v1433_v19  ;;  %v1322_v52 = vor.u32 %v1481_v49, %v1319_v50  ;;  %v1480_v54 = vld [vmem:[#allocation11 + $0x54] sm:$0xf0]  ;;  %v1479_v55 = vld [vmem:[#allocation11 + $0x54] sm:$0xf]  ;;  %v1311_v56 = vld [vmem:[#allocation11 + $0x58] sm:$0xf0] }
  0x35   :  { %437 = vmatpush.bf16.msra.mxu2 %v1448_v16  ;;  %351 = vmatpush.bf16.msra.mxu1 %v1441_v21  ;;  %v1310_v58 = vor.u32 %v1480_v54, %v1309_v53  ;;  %v1314_v59 = vor.u32 %v1479_v55, %v1311_v56  ;;  %v1301_v60 = vld [vmem:[#allocation11 + $0x40] sm:$0xf]  ;;  %v1478_v61 = vld [vmem:[#allocation11 + $0x44] sm:$0xf0]  ;;  %v1477_v62 = vld [vmem:[#allocation11 + $0x44] sm:$0xf] }
  0x36   :  { %522 = vmatpush.bf16.msra.mxu3 %v1456_v18  ;;  %v1303_v63 = vld [vmem:[#allocation11 + $0x48] sm:$0xf0]  ;;  %v1302_v1 = vor.u32 %v1478_v61, %v1301_v60  ;;  %v1293_v3 = vld [vmem:[#allocation11 + $0x30] sm:$0xf]  ;;  %v1476_v4 = vld [vmem:[#allocation11 + $0x34] sm:$0xf0] }
  0x37   :  { %v1306_v2 = vor.u32 %v1477_v62, %v1303_v63  ;;  %v1475_v5 = vld [vmem:[#allocation11 + $0x34] sm:$0xf]  ;;  %v1295_v6 = vld [vmem:[#allocation11 + $0x38] sm:$0xf0]  ;;  %v1294_v9 = vor.u32 %v1476_v4, %v1293_v3  ;;  %v1285_v11 = vld [vmem:[#allocation11 + $0x20] sm:$0xf] }
  0x38   :  { %338 = vmatpush.bf16.msra.mxu0 %v1432_v33  ;;  %v1298_v10 = vor.u32 %v1475_v5, %v1295_v6  ;;  %v1474_v12 = vld [vmem:[#allocation11 + $0x24] sm:$0xf0]  ;;  %v1473_v13 = vld [vmem:[#allocation11 + $0x24] sm:$0xf]  ;;  %v1287_v14 = vld [vmem:[#allocation11 + $0x28] sm:$0xf0] }
  0x39   :  { %438 = vmatpush.bf16.msra.mxu2 %v1447_v20  ;;  %352 = vmatpush.bf16.msra.mxu1 %v1440_v34  ;;  %v1286_v15 = vor.u32 %v1474_v12, %v1285_v11  ;;  %v1290_v16 = vor.u32 %v1473_v13, %v1287_v14  ;;  %v1277_v17 = vld [vmem:[#allocation11 + $0x10] sm:$0xf]  ;;  %v1472_v18 = vld [vmem:[#allocation11 + $0x14] sm:$0xf0]  ;;  %v1778_v19 = vmov 0.0   ;;  %v1466_v45 = vld [vmem:[#allocation10 + $0x28] sm:$0xff] }
  0x3a   :  { %523 = vmatpush.bf16.msra.mxu3 %v1455_v22  ;;  %v1471_v22 = vld [vmem:[#allocation11 + $0x14] sm:$0xf]  ;;  %v1271_v41 = vld [vmem:[#allocation11 + $0x8] sm:$0xf0]  ;;  %v1468_v43 = vld [vmem:[#allocation10 + $0x38] sm:$0xff] }
  0x3b   :  { %v1527_v46 = vld [vmem:[%s1943_s5] ss:$0 sm:$0xff]  ;;  %v1465_v49 = vld [vmem:[#allocation10 + $0x20] sm:$0xff]  ;;  %v1464_v54 = vld [vmem:[#allocation10 + $0x18] sm:$0xff] }
  0x3c   :  { %339 = vmatpush.bf16.msra.mxu0 %v1431_v35  ;;  %v1528_v47 = vld [vmem:[%s1945_s7] ss:$0 sm:$0xff]  ;;  %v1462_v61 = vld [vmem:[#allocation10 + $0x8] sm:$0xff]  ;;  %v1461_v62 = vld [vmem:[#allocation10] sm:$0xff] }
  0x3d   :  { %439 = vmatpush.bf16.msra.mxu2 %v1446_v23  ;;  %353 = vmatpush.bf16.msra.mxu1 %v1439_v36  ;;  %v1279_v23 = vld [vmem:[#allocation11 + $0x18] sm:$0xf0]  ;;  %v1463_v60 = vld [vmem:[#allocation10 + $0x10] sm:$0xff] }
  0x3e   :  { %524 = vmatpush.bf16.msra.mxu3 %v1454_v24  ;;  %v1282_v27 = vor.u32 %v1471_v22, %v1279_v23 }
  0x40   :  { %340 = vmatpush.bf16.msra.mxu0 %v1430_v37  ;;  %v1269_v37 = vld [vmem:[#allocation11] sm:$0xf] }
  0x41   :  { %440 = vmatpush.bf16.msra.mxu2 %v1445_v25  ;;  %354 = vmatpush.bf16.msra.mxu1 %v1438_v38  ;;  %v1278_v25 = vor.u32 %v1472_v18, %v1277_v17  ;;  %v1470_v38 = vld [vmem:[#allocation11 + $0x4] sm:$0xf0] }
  0x42   :  { %525 = vmatpush.bf16.msra.mxu3 %v1453_v28 }
  0x44   :  { %441 = vmatmul.bf16.vlgmr.msra.gmra.mxu2 %v364_v31  ;;  %341 = vmatpush.bf16.msra.mxu0 %v1429_v39  ;;  %v1469_v39 = vld [vmem:[#allocation11 + $0x4] sm:$0xf] }
  0x45   :  { %526 = vmatmul.bf16.vlgmr.msra.gmra.mxu3 %v449_v32  ;;  %355 = vmatpush.bf16.msra.mxu1 %v1437_v40  ;;  %v1270_v40 = vor.u32 %v1470_v38, %v1269_v37  ;;  %v1274_v42 = vor.u32 %v1469_v39, %v1271_v41 }
  0x46   :  { %728 = vmatpush.bf16.msrb.mxu2 %v1330_v48 }
  0x48   :  { %597 = vmatpush.bf16.msrb.mxu0 %v1468_v43 }
  0x49   :  { %709 = vmatpush.bf16.msrb.mxu1 %v1326_v44  ;;  %v1467_v44 = vld [vmem:[#allocation10 + $0x30] sm:$0xff] }
  0x4a   :  { %729 = vmatpush.bf16.msrb.mxu2 %v1322_v52 }
  0x4c   :  { %598 = vmatpush.bf16.msrb.mxu0 %v1467_v44 }
  0x4d   :  { %710 = vmatpush.bf16.msrb.mxu1 %v1318_v51 }
  0x4e   :  { %730 = vmatpush.bf16.msrb.mxu2 %v1314_v59 }
  0x50   :  { %599 = vmatpush.bf16.msrb.mxu0 %v1466_v45 }
  0x51   :  { %711 = vmatpush.bf16.msrb.mxu1 %v1310_v58 }
  0x52   :  { %731 = vmatpush.bf16.msrb.mxu2 %v1306_v2 }
  0x54   :  { %600 = vmatpush.bf16.msrb.mxu0 %v1465_v49 }
  0x55   :  { %712 = vmatpush.bf16.msrb.mxu1 %v1302_v1 }
  0x56   :  { %732 = vmatpush.bf16.msrb.mxu2 %v1298_v10 }
  0x58   :  { %601 = vmatpush.bf16.msrb.mxu0 %v1464_v54  ;;  %v1492_v54 = vld [vmem:[#allocation13 + $0x38] sm:$0xff] }
  0x59   :  { %713 = vmatpush.bf16.msrb.mxu1 %v1294_v9 }
  0x5a   :  { %733 = vmatpush.bf16.msrb.mxu2 %v1290_v16 }
  0x5c   :  { %602 = vmatpush.bf16.msrb.mxu0 %v1463_v60 }
  0x5d   :  { %714 = vmatpush.bf16.msrb.mxu1 %v1286_v15 }
  0x5e   :  { %734 = vmatpush.bf16.msrb.mxu2 %v1282_v27 }
  0x60   :  { %603 = vmatpush.bf16.msrb.mxu0 %v1462_v61 }
  0x61   :  { %715 = vmatpush.bf16.msrb.mxu1 %v1278_v25 }
  0x62   :  { %735 = vmatpush.bf16.msrb.mxu2 %v1274_v42 }
  0x64   :  { %604 = vmatpush.bf16.msrb.mxu0 %v1461_v62 }
  0x65   :  { %716 = vmatpush.bf16.msrb.mxu1 %v1270_v40 }
  0x98   :  { %v178_v8 = vpop.permute.xlu0 %177 }
  0x99   :  { %vm182_vm0 = vcmp.eq.s32.totalorder %v174_v0, %v178_v8  ;;  %vm183_vm1 = vcmp.eq.s32.totalorder %v175_v7, %v178_v8 }
  0x9a   :  { %v1103_v20 = vsel %vm182_vm0, 1.0, %v1778_v19  ;;  %v1104_v21 = vsel %vm183_vm1, 1.0, %v1778_v19 }
  0x9b   :  { %v194_v26 = vpack.c.bf16 %v1104_v21, %v1103_v20 }
  0x9d   :  { %v230_v31 = vunpack.c.l.b16 %v194_v26  ;;  %v231_v33 = vunpack.c.h.b16 %v194_v26 }
  0xa0   :  { %v181_v24 = vpop.permute.xlu0 %180 }
  0xa1   :  { %vm184_vm2 = vcmp.eq.s32.totalorder %v174_v0, %v181_v24  ;;  %vm185_vm3 = vcmp.eq.s32.totalorder %v175_v7, %v181_v24 }
  0xa2   :  { %v1105_v28 = vsel %vm184_vm2, 1.0, %v1778_v19  ;;  %v1106_v29 = vsel %vm185_vm3, 1.0, %v1778_v19 }
  0xa3   :  { %v195_v30 = vpack.c.bf16 %v1106_v29, %v1105_v28 }
  0xa5   :  { %v232_v32 = vunpack.c.l.b16 %v195_v30  ;;  %v233_v34 = vunpack.c.h.b16 %v195_v30 }
  0xa7   :  { %v234_v35 = vpack.c.b16 %v232_v32, %v230_v31  ;;  %v235_v36 = vpack.c.b16 %v233_v34, %v231_v33 }
  0xa9   :  { %342 = vmatmul.bf16.vlgmr.msra.gmra.mxu0 %v234_v35  ;;  %356 = vmatmul.bf16.vlgmr.msra.gmra.mxu1 %v235_v36 }
  0xaa   :  { %929 = vmatpush.bf16.msra.mxu1 %v1492_v54 }
  0xc7   :  { %v442_v48 = vpop.f32.mrf.mxu2 }
  0xc8   :  { %v443_v50 = vadd.f32 %v1527_v46, %v442_v48  ;;  %v527_v51 = vpop.f32.mrf.mxu3 }
  0xc9   :  { %v528_v52 = vadd.f32 %v1528_v47, %v527_v51 }
  0xcb   :  { %v611_v53 = vpack.c.bf16 %v528_v52, %v443_v50 }
  0xcd   :  { %717 = vmatmul.bf16.vlgmr.msrb.gmra.mxu1 %v611_v53  ;;  %736 = vmatmul.bf16.vlgmr.msrb.gmra.mxu2 %v611_v53 }
  0xcf   :  { %v444_v55 = vpop.f32.mrf.mxu2 }
  0xd0   :  { %v529_v56 = vpop.f32.mrf.mxu3  ;;  %v445_v57 = vadd.f32 %v1527_v46, %v444_v55  ;;  %v1491_v55 = vld [vmem:[#allocation13 + $0x30] sm:$0xff] }
  0xd1   :  { %v530_v58 = vadd.f32 %v1528_v47, %v529_v56  ;;  %930 = vmatpush.bf16.msra.mxu1 %v1491_v55  ;;  %v1367_v55 = vld [vmem:[#allocation14] sm:$0xf] }
  0xd3   :  { %v612_v59 = vpack.c.bf16 %v530_v58, %v445_v57  ;;  %v1490_v57 = vld [vmem:[#allocation13 + $0x28] sm:$0xff]  ;;  %v1489_v58 = vld [vmem:[#allocation13 + $0x20] sm:$0xff] }
  0xd5   :  { %931 = vmatpush.bf16.msra.mxu1 %v1490_v57  ;;  %v1493_v57 = vld [vmem:[#allocation14 + $0x4] sm:$0xf] }
  0xd9   :  { %932 = vmatpush.bf16.msra.mxu1 %v1489_v58 }
  0xdd   :  { %722 = vmatmul.bf16.gmra.mxu1 %v612_v59  ;;  %741 = vmatmul.bf16.gmra.mxu2 %v612_v59 }
 0x126   :  { %v343_v63 = vpop.f32.mrf.mxu0  ;;  %v357_v0 = vpop.f32.mrf.mxu1 }
 0x127   :  { %v1918_v3 = vadd.f32 %v357_v0, %v343_v63 }
 0x12e   :  { %v345_v1 = vpop.f32.mrf.mxu0  ;;  %v359_v2 = vpop.f32.mrf.mxu1 }
 0x12f   :  { %v1920_v4 = vadd.f32 %v359_v2, %v345_v1  ;;  %v1488_v2 = vld [vmem:[#allocation13 + $0x18] sm:$0xff] }
 0x130   :  { %933 = vmatpush.bf16.msra.mxu1 %v1488_v2  ;;  %v962_v2 = vld [vmem:[%s1950_s12] sm:$0x3]  ;;  %s1780_s12 = smov 256  }
 0x131   :  { %v532_v5 = vpack.c.bf16 %v1920_v4, %v1918_v3 }
 0x133   :  { %605 = vmatmul.bf16.vlgmr.msrb.gmra.mxu0 %v532_v5  ;;  %v1487_v5 = vld [vmem:[#allocation13 + $0x10] sm:$0xff] }
 0x134   :  { %934 = vmatpush.bf16.msra.mxu1 %v1487_v5  ;;  %v965_v5 = vperm.slane %v962_v2, 1 }
 0x14a   :  { %v718_v6 = vpop.f32.mrf.mxu1 }
 0x14b   :  { %v749_v7 = vpack.c.bf16 %v718_v6, %v718_v6  ;;  %v1486_v6 = vld [vmem:[#allocation13 + $0x8] sm:$0xff] }
 0x14c   :  { %935 = vmatpush.bf16.msra.mxu1 %v1486_v6 }
 0x14d   :  { %v755_v9 = vunpack.c.l.b16 %v749_v7  ;;  %v1485_v7 = vld [vmem:[#allocation13] sm:$0xff] }
 0x150   :  { %v737_v20 = vpop.f32.mrf.mxu2  ;;  %936 = vmatpush.bf16.msra.mxu1 %v1485_v7 }
 0x151   :  { %v816_v22 = vpack.c.bf16 %v737_v20, %v737_v20  ;;  %v1407_v20 = vld [vmem:[#allocation14 + $0x50] sm:$0xf] }
 0x152   :  { %v720_v8 = vpop.f32.mrf.mxu1 }
 0x153   :  { %v750_v10 = vpack.c.bf16 %v720_v8, %v720_v8  ;;  %v822_v25 = vunpack.c.l.b16 %v816_v22  ;;  %v1423_v8 = vld [vmem:[#allocation14 + $0x70] sm:$0xf]  ;;  %v1503_v22 = vld [vmem:[#allocation14 + $0x54] sm:$0xf] }
 0x155   :  { %v756_v11 = vunpack.c.l.b16 %v750_v10  ;;  %v1507_v10 = vld [vmem:[#allocation14 + $0x74] sm:$0xf] }
 0x157   :  { %v757_v12 = vpack.c.b16 %v756_v11, %v755_v9  ;;  %v1508_v9 = vld [vmem:[#allocation14 + $0x74] sm:$0xf0] }
 0x158   :  { %v739_v21 = vpop.f32.mrf.mxu2  ;;  %v1424_v11 = vor.u32 %v1508_v9, %v1423_v8  ;;  %v964_v8 = vperm.slane %v962_v2, 0 }
 0x159   :  { %766 = vmatpush.bf16.xpose.msrb.mxu3 %v757_v12  ;;  %v817_v23 = vpack.c.bf16 %v739_v21, %v739_v21  ;;  %v1425_v12 = vld [vmem:[#allocation14 + $0x78] sm:$0xf0]  ;;  %v1504_v21 = vld [vmem:[#allocation14 + $0x54] sm:$0xf0] }
 0x15a   :  { %v723_v13 = vpop.f32.mrf.mxu1  ;;  %1048 = vmatpush.bf16.msra.mxu2 %v1424_v11 }
 0x15b   :  { %v751_v14 = vpack.c.bf16 %v723_v13, %v723_v13  ;;  %v823_v26 = vunpack.c.l.b16 %v817_v23  ;;  %v1415_v13 = vld [vmem:[#allocation14 + $0x60] sm:$0xf]  ;;  %v1409_v23 = vld [vmem:[#allocation14 + $0x58] sm:$0xf0] }
 0x15d   :  { %v774_v16 = vunpack.c.l.b16 %v751_v14  ;;  %v824_v29 = vpack.c.b16 %v823_v26, %v822_v25  ;;  %v1506_v14 = vld [vmem:[#allocation14 + $0x64] sm:$0xf0]  ;;  %v1412_v26 = vor.u32 %v1503_v22, %v1409_v23 }
 0x160   :  { %v742_v24 = vpop.f32.mrf.mxu2 }
 0x161   :  { %v818_v31 = vpack.c.bf16 %v742_v24, %v742_v24  ;;  %v1408_v24 = vor.u32 %v1504_v21, %v1407_v20 }
 0x162   :  { %v725_v15 = vpop.f32.mrf.mxu1 }
 0x163   :  { %v752_v17 = vpack.c.bf16 %v725_v15, %v725_v15  ;;  %v844_v33 = vunpack.c.l.b16 %v818_v31  ;;  %v1428_v15 = vor.u32 %v1507_v10, %v1425_v12 }
 0x165   :  { %v775_v18 = vunpack.c.l.b16 %v752_v17  ;;  %v1417_v17 = vld [vmem:[#allocation14 + $0x68] sm:$0xf0]  ;;  %1062 = vmatpush.bf16.msra.mxu0 %v1428_v15 }
 0x167   :  { %v776_v19 = vpack.c.b16 %v775_v18, %v774_v16  ;;  %v1505_v16 = vld [vmem:[#allocation14 + $0x64] sm:$0xf]  ;;  %v1416_v18 = vor.u32 %v1506_v14, %v1415_v13 }
 0x168   :  { %v744_v30 = vpop.f32.mrf.mxu2 }
 0x169   :  { %785 = vmatpush.bf16.xpose.msra.mxu3 %v776_v19  ;;  %v819_v32 = vpack.c.bf16 %v744_v30, %v744_v30  ;;  %v1420_v19 = vor.u32 %v1505_v16, %v1417_v17  ;;  %1049 = vmatpush.bf16.msra.mxu2 %v1416_v18  ;;  %v1401_v30 = vld [vmem:[#allocation14 + $0x48] sm:$0xf0] }
 0x16b   :  { %v845_v34 = vunpack.c.l.b16 %v819_v32  ;;  %1063 = vmatpush.bf16.msra.mxu0 %v1420_v19 }
 0x16d   :  { %v846_v37 = vpack.c.b16 %v845_v34, %v844_v33  ;;  %1050 = vmatpush.bf16.msra.mxu2 %v1408_v24  ;;  %v1391_v33 = vld [vmem:[#allocation14 + $0x30] sm:$0xf]  ;;  %v1500_v34 = vld [vmem:[#allocation14 + $0x34] sm:$0xf0] }
 0x16f   :  { %1064 = vmatpush.bf16.msra.mxu0 %v1412_v26 }
 0x1b0   :  { %v606_v27 = vpop.f32.mrf.mxu0 }
 0x1b1   :  { %v747_v28 = vpack.c.bf16 %v606_v27, %v606_v27  ;;  %v1399_v27 = vld [vmem:[#allocation14 + $0x40] sm:$0xf] }
 0x1b3   :  { %767 = vmatmul.bf16.vlgmr.msrb.gmra.mxu3 %v747_v28  ;;  %v1502_v28 = vld [vmem:[#allocation14 + $0x44] sm:$0xf0] }
 0x1b4   :  { %836 = vmatpush.bf16.msrb.mxu3 %v824_v29  ;;  %v1501_v29 = vld [vmem:[#allocation14 + $0x44] sm:$0xf]  ;;  %v1400_v31 = vor.u32 %v1502_v28, %v1399_v27 }
 0x1b5   :  { %v1404_v32 = vor.u32 %v1501_v29, %v1401_v30 }
 0x1b6   :  { %1051 = vmatpush.bf16.msra.mxu2 %v1400_v31 }
 0x1b7   :  { %1065 = vmatpush.bf16.msra.mxu0 %v1404_v32 }
 0x1b8   :  { %v608_v35 = vpop.f32.mrf.mxu0 }
 0x1b9   :  { %v748_v36 = vpack.c.bf16 %v608_v35, %v608_v35  ;;  %v1499_v35 = vld [vmem:[#allocation14 + $0x34] sm:$0xf] }
 0x1c3   :  { %786 = vmatmul.bf16.vlgmr.msra.gmra.mxu3 %v748_v36  ;;  %v1393_v36 = vld [vmem:[#allocation14 + $0x38] sm:$0xf0] }
 0x1c4   :  { %858 = vmatpush.bf16.msra.mxu3 %v846_v37  ;;  %v1392_v37 = vor.u32 %v1500_v34, %v1391_v33 }
 0x1c6   :  { %1052 = vmatpush.bf16.msra.mxu2 %v1392_v37 }
 0x236   :  { %v768_v38 = vpop.f32.mrf.mxu3 }
 0x237   :  { %v792_v39 = vsel %vm791_vm4, %v768_v38, -inf }
 0x238   :  { %793 = vmax.xlane.f32.xlu1 %v792_v39  ;;  %v1396_v39 = vor.u32 %v1499_v35, %v1393_v36 }
 0x23a   :  { %1066 = vmatpush.bf16.msra.mxu0 %v1396_v39 }
 0x23e   :  { %v770_v40 = vpop.f32.mrf.mxu3 }
 0x246   :  { %v787_v41 = vpop.f32.mrf.mxu3 }
 0x247   :  { %v795_v42 = vsel %vm791_vm4, %v787_v41, -inf }
 0x248   :  { %796 = vmax.xlane.f32.xlu1 %v795_v42 }
 0x24e   :  { %v789_v43 = vpop.f32.mrf.mxu3 }
 0x24f   :  { %v1383_v43 = vld [vmem:[#allocation14 + $0x20] sm:$0xf] }
 0x2ab   :  { %v794_v44 = vpop.xlane.xlu1 %793 }
 0x2ac   :  { %v798_v45 = vsub.f32 %v768_v38, %v794_v44  ;;  %v1498_v44 = vld [vmem:[#allocation14 + $0x24] sm:$0xf0] }
 0x2ae   :  { %v800_v46 = vmul.f32 1.442695, %v798_v45  ;;  %v1497_v45 = vld [vmem:[#allocation14 + $0x24] sm:$0xf] }
 0x2b0   :  { %1529 = vpow2.f32 %v800_v46  ;;  %v1384_v46 = vor.u32 %v1498_v44, %v1383_v43 }
 0x2b2   :  { %1053 = vmatpush.bf16.msra.mxu2 %v1384_v46 }
 0x2b6   :  { %v1530_v47 = vpop.eup %1529 }
 0x2b7   :  { %v804_v48 = vsel %vm791_vm4, %v1530_v47, 0.0 }
 0x2b8   :  { %805 = vadd.xlane.f32.xlu2 %v804_v48  ;;  %v1375_v48 = vld [vmem:[#allocation14 + $0x10] sm:$0xf] }
 0x2bb   :  { %v797_v49 = vpop.xlane.xlu1 %796 }
 0x2bc   :  { %v799_v50 = vsub.f32 %v787_v41, %v797_v49  ;;  %v1496_v49 = vld [vmem:[#allocation14 + $0x14] sm:$0xf0] }
 0x2be   :  { %v802_v51 = vmul.f32 1.442695, %v799_v50 }
 0x2c0   :  { %1531 = vpow2.f32 %v802_v51  ;;  %v1495_v51 = vld [vmem:[#allocation14 + $0x14] sm:$0xf] }
 0x2c6   :  { %v1532_v52 = vpop.eup %1531 }
 0x2c7   :  { %v807_v53 = vsel %vm791_vm4, %v1532_v52, 0.0 }
 0x2c8   :  { %808 = vadd.xlane.f32.xlu2 %v807_v53  ;;  %v1376_v53 = vor.u32 %v1496_v49, %v1375_v48 }
 0x2ca   :  { %1054 = vmatpush.bf16.msra.mxu2 %v1376_v53 }
 0x32b   :  { %v806_v56 = vpop.xlane.xlu2 %805 }
 0x32c   :  { %1533 = vrcp.f32 %v806_v56  ;;  %v1494_v56 = vld [vmem:[#allocation14 + $0x4] sm:$0xf0] }
 0x32d   :  { %v1368_v58 = vor.u32 %v1494_v56, %v1367_v55 }
 0x32f   :  { %1055 = vmatpush.bf16.msra.mxu2 %v1368_v58 }
 0x332   :  { %v1534_v59 = vpop.eup %1533 }
 0x333   :  { %v812_v60 = vmul.f32 %v1534_v59, %v1530_v47  ;;  %v1385_v47 = vld [vmem:[#allocation14 + $0x28] sm:$0xf0] }
 0x334   :  { %v1388_v50 = vor.u32 %v1497_v45, %v1385_v47  ;;  %v1369_v59 = vld [vmem:[#allocation14 + $0x8] sm:$0xf0] }
 0x335   :  { %v814_v61 = vpack.c.bf16 %v812_v60, %v812_v60  ;;  %v1372_v60 = vor.u32 %v1493_v57, %v1369_v59 }
 0x336   :  { %1067 = vmatpush.bf16.msra.mxu0 %v1388_v50 }
 0x337   :  { %1331 = vmatmul.msk.bf16.vlgmr.msrb.gmra.mxu3 %vm791_vm4, %v814_v61 }
 0x33b   :  { %v809_v62 = vpop.xlane.xlu2 %808 }
 0x33c   :  { %1535 = vrcp.f32 %v809_v62 }
 0x342   :  { %v1536_v63 = vpop.eup %1535 }
 0x343   :  { %v813_v0 = vmul.f32 %v1536_v63, %v1532_v52  ;;  %v1377_v52 = vld [vmem:[#allocation14 + $0x18] sm:$0xf0] }
 0x344   :  { %v1380_v54 = vor.u32 %v1495_v51, %v1377_v52 }
 0x345   :  { %v815_v1 = vpack.c.bf16 %v813_v0, %v813_v0 }
 0x346   :  { %1068 = vmatpush.bf16.msra.mxu0 %v1380_v54 }
 0x347   :  { %1332 = vmatmul.msk.bf16.vlgmr.msra.gmra.mxu3 %vm791_vm4, %v815_v1 }
 0x34a   :  { %1069 = vmatpush.bf16.msra.mxu0 %v1372_v60 }
 0x3ba   :  { %v838_v25 = vpop.f32.mrf.mxu3 }
 0x3c2   :  { %v840_v38 = vpop.f32.mrf.mxu3 }
 0x3ca   :  { %v860_v40 = vpop.f32.mrf.mxu3 }
 0x3cb   :  { %v864_v41 = vpack.c.bf16 %v860_v40, %v838_v25 }
 0x3cd   :  { %937 = vmatmul.bf16.vlgmr.msra.gmra.mxu1 %v864_v41 }
 0x3d2   :  { %v862_v42 = vpop.f32.mrf.mxu3 }
 0x44a   :  { %v938_v61 = vpop.f32.mrf.mxu1 }
 0x44b   :  { %v943_v63 = vadd.f32 %v938_v61, %v1918_v3 }
 0x452   :  { %v940_v62 = vpop.f32.mrf.mxu1 }
 0x453   :  { %v944_v0 = vadd.f32 %v940_v62, %v1920_v4 }
 0x455   :  { %v945_v1 = vpack.c.bf16 %v944_v0, %v943_v63 }
 0x457   :  { %1056 = vmatmul.bf16.vlgmr.msra.gmra.mxu2 %v945_v1  ;;  %1070 = vmatmul.bf16.vlgmr.msra.gmra.mxu0 %v945_v1 }
 0x4d4   :  { %v1071_v6 = vpop.f32.mrf.mxu0 }
 0x4d5   :  { %v1072_v7 = vadd.f32 %v1071_v6, %v965_v5 }
 0x4d7   :  { %1077 = vst [vmem:[#allocation16 + $0x8] sm:$0xff] %v1072_v7 }
 0x4da   :  { %v1057_v9 = vpop.f32.mrf.mxu2 }
 0x4db   :  { %v1058_v10 = vadd.f32 %v1057_v9, %v964_v8 }
 0x4dc   :  { %v1073_v11 = vpop.f32.mrf.mxu0 }
 0x4dd   :  { %1076 = vst [vmem:[#allocation16] sm:$0xff] %v1058_v10  ;;  %v1074_v12 = vadd.f32 %v1073_v11, %v965_v5 }
 0x4df   :  { %1079 = vst [vmem:[#allocation16 + $0x18] sm:$0xff] %v1074_v12 }
 0x4e2   :  { %v1059_v3 = vpop.f32.mrf.mxu2 }
 0x4e3   :  { %v1060_v4 = vadd.f32 %v1059_v3, %v964_v8 }
 0x4e5   :  { %1078 = vst [vmem:[#allocation16 + $0x10] sm:$0xff] %v1060_v4 }
 0x4e6   :  { %1092 = dma.vmem_to_hbm [thread:$0]  %s1085_s19, 512, %s1087_s4, [#allocation4], %s1780_s12, %s1780_s12, %s1781_s21  }
 0x4e7   :  { %1763 = dma.done.wait [#allocation4], 512  }
 0x4e8   :  { %1764 = vsyncadd [#allocation4], 4294966784 }
 0x4e9   :  { %1097 = vsyncpa [#allocation3], 1 }
 0x4ea   :  { %1098 = vsyncpa [#allocation6], 1 }
 0x4eb   :  { %1099 = vsyncpa [#allocation9], 1 }
 0x4ec   :  { %1100 = vsyncpa [#allocation12], 1 }
 0x4ed   :  { %1101 = vsyncpa [#allocation15], 1 }
 0x4ee   :  { %1102 = vsyncpa [#allocation4], 1 }

</bundles_post_ra>
